<compile_context>
chip_gen: v5e
topology: v5e:2x2
jax: 0.10.0
libtpu: 0.0.40
codegen_flags: <defaults>
</compile_context>

<pallas_src>
import functools

import jax
import jax.numpy as jnp
from jax.experimental import pallas as pl
from jax.experimental.pallas import tpu as pltpu


def _conv_block_kernel(a_ref, b_ref, scale_ref, shift_ref, out_ref, *,
                       apply_relu: bool, b_resident: bool, tk: int):
    """One (M-tile, K-tile) step of the fused conv-as-GEMM."""
    k = pl.program_id(1)

    @pl.when(k == 0)
    def _():
        out_ref[...] = jnp.zeros_like(out_ref)

    if b_resident:
        # Bw lives fully in VMEM (DMA'd once); take the current K slice.
        k_start = pl.multiple_of(k * tk, tk)
        b_tile = b_ref[pl.ds(k_start, tk), :]
    else:
        b_tile = b_ref[...]

    # bf16 x bf16 -> f32 accumulate directly into the resident output tile.
    out_ref[...] += jnp.dot(a_ref[...], b_tile,
                            preferred_element_type=jnp.float32)

    @pl.when(k == pl.num_programs(1) - 1)
    def _():
        y = out_ref[...] * scale_ref[...] + shift_ref[...]
        if apply_relu:
            y = jnp.maximum(y, 0.0)
        out_ref[...] = y


def _round_up(x, m):
    return ((x + m - 1) // m) * m


def _pick_tk(k_pad):
    for cand in (512, 384, 256, 128):
        if k_pad % cand == 0:
            return cand
    return 128


def _vmem_estimate(tm, tk, k_pad, cout_pad, b_resident):
    a_bytes = 2 * tm * tk * 2                    # double-buffered bf16 A tile
    if b_resident:
        b_bytes = 2 * k_pad * cout_pad * 2       # resident bf16 weights
    else:
        b_bytes = 2 * tk * cout_pad * 2          # double-buffered bf16 B tile
    out_bytes = 2 * tm * cout_pad * 4            # double-buffered f32 out tile
    misc = 2 * 2 * cout_pad * 4                  # scale / shift rows
    return a_bytes + b_bytes + out_bytes + misc


def conv_block(x, weight, bias, *, stride=1, relu=True, same_padding=False,
               bn_params=None, tm=512):
    """ConvBlock forward pass.

    x:      [N, C_in, H, W]      (NCHW, as in PyTorch)
    weight: [C_out, C_in, KH, KW]
    bias:   [C_out]
    bn_params: None or (gamma, beta, running_mean, running_var, eps)
    Returns [N, C_out, H_out, W_out] float32.
    """
    x = jnp.asarray(x, jnp.float32)
    weight = jnp.asarray(weight, jnp.float32)
    bias = jnp.asarray(bias, jnp.float32)

    n, c_in, h, w = x.shape
    c_out, c_in_w, kh, kw = weight.shape
    assert c_in == c_in_w
    pad = (kh - 1) // 2 if same_padding else 0
    h_out = (h + 2 * pad - kh) // stride + 1
    w_out = (w + 2 * pad - kw) // stride + 1

    # ---- im2col (layout plumbing in plain JAX) -------------------------------
    x_nhwc = jnp.transpose(x, (0, 2, 3, 1))                       # [N,H,W,Cin]
    x_padded = jnp.pad(x_nhwc, ((0, 0), (pad, pad), (pad, pad), (0, 0)))
    patches = []
    for ih in range(kh):
        for iw in range(kw):
            patches.append(
                x_padded[:, ih:ih + stride * (h_out - 1) + 1:stride,
                            iw:iw + stride * (w_out - 1) + 1:stride, :])
    a = jnp.concatenate(patches, axis=-1).reshape(n * h_out * w_out,
                                                  kh * kw * c_in)
    # Weight rows in the same (kh, kw, cin) order as the patch concat.
    bw = jnp.transpose(weight, (2, 3, 1, 0)).reshape(kh * kw * c_in, c_out)

    # ---- fold bias + (eval-mode) BatchNorm into per-channel scale/shift ------
    if bn_params is None:
        scale = jnp.ones((c_out,), jnp.float32)
        shift = bias
    else:
        gamma, beta, mean, var, eps = bn_params
        inv_std = gamma.astype(jnp.float32) * jax.lax.rsqrt(
            var.astype(jnp.float32) + jnp.float32(eps))
        scale = inv_std
        shift = beta.astype(jnp.float32) + (bias - mean.astype(jnp.float32)) * inv_std

    # ---- pad to TPU-friendly tile multiples ----------------------------------
    m, kdim = a.shape
    k_pad = _round_up(kdim, 128)
    tk = _pick_tk(k_pad)                       # 128-aligned divisor of k_pad
    cout_pad = _round_up(c_out, 128)           # lane-dense output stores

    # Keep the weight matrix resident in VMEM when it is small enough.
    b_resident = (k_pad * cout_pad * 2) <= (8 << 20)

    # Shrink tm to the problem size and to a <= ~48 MiB VMEM budget (v7x-safe).
    tm_eff = min(tm, _round_up(m, 8))
    while tm_eff > 64 and _vmem_estimate(tm_eff, tk, k_pad, cout_pad,
                                         b_resident) > (48 << 20):
        tm_eff //= 2
    m_pad = _round_up(m, tm_eff)

    est_bytes = _vmem_estimate(tm_eff, tk, k_pad, cout_pad, b_resident)
    vmem_limit = int(min(max(est_bytes + (4 << 20), 32 << 20), 64 << 20))

    # bf16 GEMM operands (MXU-native, half the HBM/DMA bytes); f32 epilogue.
    a = jnp.pad(a, ((0, m_pad - m), (0, k_pad - kdim))).astype(jnp.bfloat16)
    bw = jnp.pad(bw, ((0, k_pad - kdim),
                      (0, cout_pad - c_out))).astype(jnp.bfloat16)
    scale = jnp.pad(scale, (0, cout_pad - c_out)).reshape(1, cout_pad)
    shift = jnp.pad(shift, (0, cout_pad - c_out)).reshape(1, cout_pad)

    grid = (m_pad // tm_eff, k_pad // tk)
    kernel = functools.partial(_conv_block_kernel, apply_relu=bool(relu),
                               b_resident=b_resident, tk=tk)

    if b_resident:
        # Constant index_map => weights DMA'd into VMEM once and stay resident.
        b_spec = pl.BlockSpec((k_pad, cout_pad), lambda i, k: (0, 0))
    else:
        b_spec = pl.BlockSpec((tk, cout_pad), lambda i, k: (k, 0))

    out = pl.pallas_call(
        kernel,
        out_shape=jax.ShapeDtypeStruct((m_pad, cout_pad), jnp.float32),
        grid_spec=pltpu.PrefetchScalarGridSpec(
            num_scalar_prefetch=0,
            grid=grid,
            in_specs=[
                pl.BlockSpec((tm_eff, tk), lambda i, k: (i, k)),    # A tile
                b_spec,                                             # weights
                pl.BlockSpec((1, cout_pad), lambda i, k: (0, 0)),   # scale
                pl.BlockSpec((1, cout_pad), lambda i, k: (0, 0)),   # shift
            ],
            out_specs=pl.BlockSpec((tm_eff, cout_pad), lambda i, k: (i, 0)),
        ),
        compiler_params=pltpu.CompilerParams(
            dimension_semantics=("parallel", "arbitrary"),
            vmem_limit_bytes=vmem_limit),
    )(a, bw, scale, shift)

    out = out[:m, :c_out].reshape(n, h_out, w_out, c_out)
    return jnp.transpose(out, (0, 3, 1, 2))                        # back to NCHW


def conv_block_ref(x, weight, bias, *, stride, same_padding, bn_params, relu):
    """Pure-JAX reference for correctness checking."""
    kh = weight.shape[2]
    pad = (kh - 1) // 2 if same_padding else 0
    y = jax.lax.conv_general_dilated(
        x, weight, window_strides=(stride, stride),
        padding=((pad, pad), (pad, pad)),
        dimension_numbers=("NCHW", "OIHW", "NCHW"))
    y = y + bias.reshape(1, -1, 1, 1)
    if bn_params is not None:
        gamma, beta, mean, var, eps = bn_params
        y = (gamma.reshape(1, -1, 1, 1) * (y - mean.reshape(1, -1, 1, 1))
             / jnp.sqrt(var.reshape(1, -1, 1, 1) + eps)
             + beta.reshape(1, -1, 1, 1))
    if relu:
        y = jnp.maximum(y, 0.0)
    return y


if __name__ == "__main__":
    key = jax.random.PRNGKey(0)
    k1, k2, k3, k4, k5, k6, k7 = jax.random.split(key, 7)

    N, C_IN, H, W = 2, 4, 16, 16
    C_OUT, KSZ = 8, 3
    STRIDE = 1
    EPS = 0.001

    x = jax.random.normal(k1, (N, C_IN, H, W), jnp.float32)
    weight = 0.1 * jax.random.normal(k2, (C_OUT, C_IN, KSZ, KSZ), jnp.float32)
    bias = 0.1 * jax.random.normal(k3, (C_OUT,), jnp.float32)
    gamma = 1.0 + 0.1 * jax.random.normal(k4, (C_OUT,), jnp.float32)
    beta = 0.1 * jax.random.normal(k5, (C_OUT,), jnp.float32)
    running_mean = 0.1 * jax.random.normal(k6, (C_OUT,), jnp.float32)
    running_var = 1.0 + 0.5 * jax.random.uniform(k7, (C_OUT,), jnp.float32)
    bn_params = (gamma, beta, running_mean, running_var, EPS)

    # ConvBlock(in=4, out=8, k=3, stride=1, relu=True, same_padding=True, bn=True)
    out = conv_block(x, weight, bias, stride=STRIDE, relu=True,
                     same_padding=True, bn_params=bn_params)
    out = jax.block_until_ready(out)
    ref = conv_block_ref(x, weight, bias, stride=STRIDE, same_padding=True,
                         bn_params=bn_params, relu=True)
    assert out.shape == (N, C_OUT, H, W), out.shape
    assert jnp.allclose(out, ref, atol=2e-2, rtol=2e-2), (
        float(jnp.max(jnp.abs(out - ref))))

    # ConvBlock(..., relu=True, same_padding=False, bn=False) — default config.
    out2 = conv_block(x, weight, bias, stride=STRIDE, relu=True,
                      same_padding=False, bn_params=None)
    out2 = jax.block_until_ready(out2)
    ref2 = conv_block_ref(x, weight, bias, stride=STRIDE, same_padding=False,
                          bn_params=None, relu=True)
    assert out2.shape == (N, C_OUT, H - KSZ + 1, W - KSZ + 1), out2.shape
    assert jnp.allclose(out2, ref2, atol=2e-2, rtol=2e-2), (
        float(jnp.max(jnp.abs(out2 - ref2))))

    print("KERNEL_OK")
</pallas_src>

<mosaic_0001>
module attributes {stable_mosaic.version = 11 : i64} {
  func.func @_conv_block_kernel(%arg0: i32, %arg1: i32, %arg2: memref<512x128xbf16, #tpu.memory_space<vmem>>, %arg3: memref<128x128xbf16, #tpu.memory_space<vmem>>, %arg4: memref<1x128xf32, #tpu.memory_space<vmem>>, %arg5: memref<1x128xf32, #tpu.memory_space<vmem>>, %arg6: memref<512x128xf32, #tpu.memory_space<vmem>>) attributes {dimension_semantics = [#tpu.dimension_semantics<parallel>, #tpu.dimension_semantics<arbitrary>], iteration_bounds = array<i64: 1, 1>, scalar_prefetch = 0 : i64, scratch_operands = 0 : i64, tpu.core_type = #tpu.core_type<tc>, window_params = [{transform_indices = @transform_0, window_bounds = array<i64: 512, 128>}, {pipeline_mode = #tpu.pipeline_mode<synchronous>, transform_indices = @transform_1, window_bounds = array<i64: 128, 128>}, {pipeline_mode = #tpu.pipeline_mode<synchronous>, transform_indices = @transform_2, window_bounds = array<i64: 1, 128>}, {pipeline_mode = #tpu.pipeline_mode<synchronous>, transform_indices = @transform_3, window_bounds = array<i64: 1, 128>}, {transform_indices = @transform_4, window_bounds = array<i64: 512, 128>}]} {
    %c0_i32 = arith.constant 0 : i32
    %0 = arith.cmpi eq, %arg1, %c0_i32 : i32
    %1 = arith.extui %0 : i1 to i32
    %c0_i32_0 = arith.constant 0 : i32
    %2 = arith.cmpi ne, %1, %c0_i32_0 : i32
    scf.if %2 {
      %cst_9 = arith.constant 0.000000e+00 : f32
      %15 = vector.broadcast %cst_9 : f32 to vector<512x128xf32>
      %c0_10 = arith.constant 0 : index
      %c0_11 = arith.constant 0 : index
      %16 = vector.load %arg6[%c0_10, %c0_11] : memref<512x128xf32, #tpu.memory_space<vmem>>, vector<512x128xf32>
      tpu.vector_store %arg6[%c0_10, %c0_11], %15 {strides = array<i32>} : memref<512x128xf32, #tpu.memory_space<vmem>>, vector<512x128xf32>,
    } else {
    }
    %c128_i32 = arith.constant 128 : i32
    %3 = arith.muli %arg1, %c128_i32 : i32
    %4 = tpu.assume_multiple %3, 128 : i32
    %5 = arith.index_cast %4 : i32 to index
    %c0 = arith.constant 0 : index
    %6 = vector.load %arg3[%5, %c0] : memref<128x128xbf16, #tpu.memory_space<vmem>>, vector<128x128xbf16>
    %c0_1 = arith.constant 0 : index
    %c0_2 = arith.constant 0 : index
    %7 = vector.load %arg6[%c0_1, %c0_2] : memref<512x128xf32, #tpu.memory_space<vmem>>, vector<512x128xf32>
    %c0_3 = arith.constant 0 : index
    %c0_4 = arith.constant 0 : index
    %8 = vector.load %arg2[%c0_3, %c0_4] : memref<512x128xbf16, #tpu.memory_space<vmem>>, vector<512x128xbf16>
    %cst = arith.constant dense<0.000000e+00> : vector<512x128xf32>
    %9 = tpu.matmul %8, %6, %cst {dimension_numbers = #tpu.dot_dimension_numbers<[1], [0], [0], [1], [0, 0, 1, 1], [], []>} : vector<512x128xbf16>, vector<128x128xbf16>, vector<512x128xf32> -> vector<512x128xf32>
    %10 = arith.addf %7, %9 : vector<512x128xf32>
    %c0_5 = arith.constant 0 : index
    %c0_6 = arith.constant 0 : index
    %11 = vector.load %arg6[%c0_5, %c0_6] : memref<512x128xf32, #tpu.memory_space<vmem>>, vector<512x128xf32>
    tpu.vector_store %arg6[%c0_5, %c0_6], %10 {strides = array<i32>} : memref<512x128xf32, #tpu.memory_space<vmem>>, vector<512x128xf32>,
    %c0_i32_7 = arith.constant 0 : i32
    %12 = arith.cmpi eq, %arg1, %c0_i32_7 : i32
    %13 = arith.extui %12 : i1 to i32
    %c0_i32_8 = arith.constant 0 : i32
    %14 = arith.cmpi ne, %13, %c0_i32_8 : i32
    scf.if %14 {
      %c0_9 = arith.constant 0 : index
      %c0_10 = arith.constant 0 : index
      %15 = vector.load %arg6[%c0_9, %c0_10] : memref<512x128xf32, #tpu.memory_space<vmem>>, vector<512x128xf32>
      %c0_11 = arith.constant 0 : index
      %c0_12 = arith.constant 0 : index
      %16 = vector.load %arg4[%c0_11, %c0_12] : memref<1x128xf32, #tpu.memory_space<vmem>>, vector<1x128xf32>
      %17 = vector.broadcast %16 : vector<1x128xf32> to vector<512x128xf32>
      %18 = arith.mulf %15, %17 : vector<512x128xf32>
      %c0_13 = arith.constant 0 : index
      %c0_14 = arith.constant 0 : index
      %19 = vector.load %arg5[%c0_13, %c0_14] : memref<1x128xf32, #tpu.memory_space<vmem>>, vector<1x128xf32>
      %20 = vector.broadcast %19 : vector<1x128xf32> to vector<512x128xf32>
      %21 = arith.addf %18, %20 : vector<512x128xf32>
      %cst_15 = arith.constant 0.000000e+00 : f32
      %22 = vector.broadcast %cst_15 : f32 to vector<512x128xf32>
      %23 = arith.maximumf %21, %22 : vector<512x128xf32>
      %c0_16 = arith.constant 0 : index
      %c0_17 = arith.constant 0 : index
      %24 = vector.load %arg6[%c0_16, %c0_17] : memref<512x128xf32, #tpu.memory_space<vmem>>, vector<512x128xf32>
      tpu.vector_store %arg6[%c0_16, %c0_17], %23 {strides = array<i32>} : memref<512x128xf32, #tpu.memory_space<vmem>>, vector<512x128xf32>,
    } else {
    }
    return
  }
  func.func @transform_0(%arg0: i32, %arg1: i32) -> (i32, i32) {
    %c0_i32 = arith.constant 0 : i32
    return %arg0, %arg1 : i32, i32
  }
  func.func @transform_1(%arg0: i32, %arg1: i32) -> (i32, i32) {
    %c0_i32 = arith.constant 0 : i32
    %c0_i32_0 = arith.constant 0 : i32
    %c0_i32_1 = arith.constant 0 : i32
    return %c0_i32, %c0_i32_0 : i32, i32
  }
  func.func @transform_2(%arg0: i32, %arg1: i32) -> (i32, i32) {
    %c0_i32 = arith.constant 0 : i32
    %c0_i32_0 = arith.constant 0 : i32
    %c0_i32_1 = arith.constant 0 : i32
    return %c0_i32, %c0_i32_0 : i32, i32
  }
  func.func @transform_3(%arg0: i32, %arg1: i32) -> (i32, i32) {
    %c0_i32 = arith.constant 0 : i32
    %c0_i32_0 = arith.constant 0 : i32
    %c0_i32_1 = arith.constant 0 : i32
    return %c0_i32, %c0_i32_0 : i32, i32
  }
  func.func @transform_4(%arg0: i32, %arg1: i32) -> (i32, i32) {
    %c0_i32 = arith.constant 0 : i32
    %c0_i32_0 = arith.constant 0 : i32
    return %arg0, %c0_i32 : i32, i32
  }
}

</mosaic_0001>

<bundles_post_ra>
// kernel: tpu_custom_call.1
= control target key start
LH: loop header
LB: loop body
LE: loop exit
PB: predicated region body
PF: predicated region fallthrough
CT: control target
= control target key end

     0   :  { %9 = vsyncpa [#allocation3], 0  ;;  %s1648_s0 = inlined_call_operand.hbm [shape: bf16[512,128], index: 0, kind: input, shape index: {}]   ;;  %s1649_s1 = inlined_call_operand.hbm [shape: bf16[128,128], index: 1, kind: input, shape index: {}]   ;;  %s1650_s2 = inlined_call_operand.vmem [shape: f32[1,128], index: 2, kind: input, shape index: {}]   ;;  %s1651_s3 = inlined_call_operand.vmem [shape: f32[1,128], index: 3, kind: input, shape index: {}]   ;;  %s1652_s4 = inlined_call_operand.hbm [shape: f32[512,128], index: 4, kind: output, shape index: {}]  }
   0x1   :  { %10 = vsyncpa [#allocation6], 0 }
   0x2   :  { %11 = vsyncpa [#allocation4], 0  ;;  %s16_s17 = sshll.u32 %s1648_s0, 4  ;;  %s1469_s18 = smov [#allocation2]   ;;  %s17_s17 = int_to_ptr.hbm [resolvable:$true] %s16_s17 }
   0x3   :  { %s18_s19 = sshll.u32 %s1469_s18, 4  ;;  %s29_s22 = sshll.u32 %s1649_s1, 4  ;;  %s19_s19 = int_to_ptr.vmem [resolvable:$true] %s18_s19  ;;  %s30_s22 = int_to_ptr.hbm [resolvable:$true] %s29_s22 }
   0x4   :  { %s1470_s23 = smov 64   ;;  %s1471_s24 = smov 4  }
   0x5   :  { %24 = dma.hbm_to_vmem [thread:$0]  %s17_s17, 4096, %s19_s19, [#allocation3], %s1470_s23, %s1470_s23, %s1471_s24  }
   0x6   :  { %s1472_s25 = smov [#allocation5]  }
   0x7   :  { %s31_s26 = sshll.u32 %s1472_s25, 4  ;;  %s32_s26 = int_to_ptr.vmem [resolvable:$true] %s31_s26 }
   0x8   :  { %37 = dma.hbm_to_vmem [thread:$0]  %s30_s22, 1024, %s32_s26, [#allocation6], %s1470_s23, %s1470_s23, %s1471_s24  }
   0x9   :  { %1463 = dma.done.wait [#allocation3], 4096  }
   0xa   :  { %1464 = vsyncadd [#allocation3], 4294963200 }
   0xb   :  { %1465 = dma.done.wait [#allocation6], 1024  }
   0xc   :  { %1466 = vsyncadd [#allocation6], 4294966272  ;;  %v1324_v0 = vld [vmem:[#allocation5 + $0x38] sm:$0xff]  ;;  %v1323_v1 = vld [vmem:[#allocation5 + $0x30] sm:$0xff]  ;;  %s1141_s5 = sshll.u32 %s1652_s4, 4  ;;  %s1474_s6 = smov 128   ;;  %s1142_s5 = int_to_ptr.hbm [resolvable:$true] %s1141_s5 }
   0xd   :  { %507 = vmatpush.bf16.msra.mxu0 %v1324_v0  ;;  %1357 = vmatpush.bf16.msra.mxu1 %v1324_v0  ;;  %v1322_v2 = vld [vmem:[#allocation5 + $0x28] sm:$0xff]  ;;  %v1321_v3 = vld [vmem:[#allocation5 + $0x20] sm:$0xff]  ;;  %v1320_v4 = vld [vmem:[#allocation5 + $0x18] sm:$0xff]  ;;  %s1475_s7 = smov 8  }
   0xe   :  { %1358 = vmatpush.bf16.msra.mxu2 %v1324_v0  ;;  %1359 = vmatpush.bf16.msra.mxu3 %v1324_v0  ;;  %v1319_v5 = vld [vmem:[#allocation5 + $0x10] sm:$0xff]  ;;  %v1318_v6 = vld [vmem:[#allocation5 + $0x8] sm:$0xff]  ;;  %v1317_v7 = vld [vmem:[#allocation5] sm:$0xff] }
   0xf   :  { %v1325_v8 = vld [vmem:[#allocation2] sm:$0xff]  ;;  %v1326_v12 = vld [vmem:[#allocation2 + $0x8] sm:$0xff]  ;;  %v1327_v16 = vld [vmem:[#allocation2 + $0x10] sm:$0xff] }
  0x10   :  { %v1333_v9 = vld [vmem:[#allocation2 + $0x40] sm:$0xff]  ;;  %v1334_v13 = vld [vmem:[#allocation2 + $0x48] sm:$0xff]  ;;  %v1335_v17 = vld [vmem:[#allocation2 + $0x50] sm:$0xff] }
  0x11   :  { %508 = vmatpush.bf16.msra.mxu0 %v1323_v1  ;;  %1360 = vmatpush.bf16.msra.mxu1 %v1323_v1  ;;  %v1341_v10 = vld [vmem:[#allocation2 + $0x80] sm:$0xff]  ;;  %v1342_v14 = vld [vmem:[#allocation2 + $0x88] sm:$0xff]  ;;  %v1343_v18 = vld [vmem:[#allocation2 + $0x90] sm:$0xff] }
  0x12   :  { %1361 = vmatpush.bf16.msra.mxu2 %v1323_v1  ;;  %1362 = vmatpush.bf16.msra.mxu3 %v1323_v1  ;;  %v1349_v11 = vld [vmem:[#allocation2 + $0xc0] sm:$0xff]  ;;  %v1350_v15 = vld [vmem:[#allocation2 + $0xc8] sm:$0xff]  ;;  %v1351_v19 = vld [vmem:[#allocation2 + $0xd0] sm:$0xff] }
  0x13   :  { %v1328_v20 = vld [vmem:[#allocation2 + $0x18] sm:$0xff]  ;;  %v1329_v24 = vld [vmem:[#allocation2 + $0x20] sm:$0xff]  ;;  %v1330_v28 = vld [vmem:[#allocation2 + $0x28] sm:$0xff] }
  0x14   :  { %v1336_v21 = vld [vmem:[#allocation2 + $0x58] sm:$0xff]  ;;  %v1337_v25 = vld [vmem:[#allocation2 + $0x60] sm:$0xff]  ;;  %v1338_v29 = vld [vmem:[#allocation2 + $0x68] sm:$0xff] }
  0x15   :  { %509 = vmatpush.bf16.msra.mxu0 %v1322_v2  ;;  %1363 = vmatpush.bf16.msra.mxu1 %v1322_v2  ;;  %v1344_v22 = vld [vmem:[#allocation2 + $0x98] sm:$0xff]  ;;  %v1345_v26 = vld [vmem:[#allocation2 + $0xa0] sm:$0xff]  ;;  %v1346_v30 = vld [vmem:[#allocation2 + $0xa8] sm:$0xff] }
  0x16   :  { %1364 = vmatpush.bf16.msra.mxu2 %v1322_v2  ;;  %1365 = vmatpush.bf16.msra.mxu3 %v1322_v2  ;;  %v1352_v23 = vld [vmem:[#allocation2 + $0xd8] sm:$0xff]  ;;  %v1353_v27 = vld [vmem:[#allocation2 + $0xe0] sm:$0xff]  ;;  %v1354_v31 = vld [vmem:[#allocation2 + $0xe8] sm:$0xff] }
  0x17   :  { %v1331_v32 = vld [vmem:[#allocation2 + $0x30] sm:$0xff]  ;;  %v1332_v36 = vld [vmem:[#allocation2 + $0x38] sm:$0xff]  ;;  %v1510_v40 = vld [vmem:[%s1650_s2] ss:$0 sm:$0xff]  ;;  %s1473_s2 = smov [#allocation7]  }
  0x18   :  { %v1339_v33 = vld [vmem:[#allocation2 + $0x70] sm:$0xff]  ;;  %v1340_v37 = vld [vmem:[#allocation2 + $0x78] sm:$0xff]  ;;  %v1515_v43 = vld [vmem:[%s1651_s3] ss:$0 sm:$0xff]  ;;  %s1139_s3 = sshll.u32 %s1473_s2, 4  ;;  %s1140_s3 = int_to_ptr.vmem [resolvable:$true] %s1139_s3 }
  0x19   :  { %510 = vmatpush.bf16.msra.mxu0 %v1321_v3  ;;  %1366 = vmatpush.bf16.msra.mxu1 %v1321_v3  ;;  %v1347_v34 = vld [vmem:[#allocation2 + $0xb0] sm:$0xff]  ;;  %v1348_v38 = vld [vmem:[#allocation2 + $0xb8] sm:$0xff] }
  0x1a   :  { %1367 = vmatpush.bf16.msra.mxu2 %v1321_v3  ;;  %1368 = vmatpush.bf16.msra.mxu3 %v1321_v3  ;;  %v1355_v35 = vld [vmem:[#allocation2 + $0xf0] sm:$0xff]  ;;  %v1356_v39 = vld [vmem:[#allocation2 + $0xf8] sm:$0xff] }
  0x1d   :  { %511 = vmatpush.bf16.msra.mxu0 %v1320_v4  ;;  %1369 = vmatpush.bf16.msra.mxu1 %v1320_v4 }
  0x1e   :  { %1370 = vmatpush.bf16.msra.mxu2 %v1320_v4  ;;  %1371 = vmatpush.bf16.msra.mxu3 %v1320_v4 }
  0x21   :  { %512 = vmatpush.bf16.msra.mxu0 %v1319_v5  ;;  %1372 = vmatpush.bf16.msra.mxu1 %v1319_v5 }
  0x22   :  { %1373 = vmatpush.bf16.msra.mxu2 %v1319_v5  ;;  %1374 = vmatpush.bf16.msra.mxu3 %v1319_v5 }
  0x25   :  { %513 = vmatpush.bf16.msra.mxu0 %v1318_v6  ;;  %1375 = vmatpush.bf16.msra.mxu1 %v1318_v6 }
  0x26   :  { %1376 = vmatpush.bf16.msra.mxu2 %v1318_v6  ;;  %1377 = vmatpush.bf16.msra.mxu3 %v1318_v6 }
  0x29   :  { %514 = vmatpush.bf16.msra.mxu0 %v1317_v7  ;;  %1378 = vmatpush.bf16.msra.mxu1 %v1317_v7 }
  0x2a   :  { %1379 = vmatpush.bf16.msra.mxu2 %v1317_v7  ;;  %1380 = vmatpush.bf16.msra.mxu3 %v1317_v7 }
  0x2c   :  { %515 = vmatmul.bf16.vlgmr.msra.gmra.mxu0 %v1325_v8  ;;  %555 = vmatmul.bf16.vlgmr.msra.gmra.mxu1 %v1333_v9 }
  0x2d   :  { %595 = vmatmul.bf16.vlgmr.msra.gmra.mxu2 %v1341_v10  ;;  %635 = vmatmul.bf16.vlgmr.msra.gmra.mxu3 %v1349_v11 }
  0x3c   :  { %520 = vmatmul.bf16.gmra.mxu0 %v1326_v12  ;;  %560 = vmatmul.bf16.gmra.mxu1 %v1334_v13 }
  0x3d   :  { %600 = vmatmul.bf16.gmra.mxu2 %v1342_v14  ;;  %640 = vmatmul.bf16.gmra.mxu3 %v1350_v15 }
  0x4c   :  { %525 = vmatmul.bf16.gmra.mxu0 %v1327_v16  ;;  %565 = vmatmul.bf16.gmra.mxu1 %v1335_v17 }
  0x4d   :  { %605 = vmatmul.bf16.gmra.mxu2 %v1343_v18  ;;  %645 = vmatmul.bf16.gmra.mxu3 %v1351_v19 }
  0x5c   :  { %530 = vmatmul.bf16.gmra.mxu0 %v1328_v20  ;;  %570 = vmatmul.bf16.gmra.mxu1 %v1336_v21 }
  0x5d   :  { %610 = vmatmul.bf16.gmra.mxu2 %v1344_v22  ;;  %650 = vmatmul.bf16.gmra.mxu3 %v1352_v23 }
  0x6c   :  { %535 = vmatmul.bf16.gmra.mxu0 %v1329_v24  ;;  %575 = vmatmul.bf16.gmra.mxu1 %v1337_v25 }
  0x6d   :  { %615 = vmatmul.bf16.gmra.mxu2 %v1345_v26  ;;  %655 = vmatmul.bf16.gmra.mxu3 %v1353_v27 }
  0x7c   :  { %540 = vmatmul.bf16.gmra.mxu0 %v1330_v28  ;;  %580 = vmatmul.bf16.gmra.mxu1 %v1338_v29 }
  0x7d   :  { %620 = vmatmul.bf16.gmra.mxu2 %v1346_v30  ;;  %660 = vmatmul.bf16.gmra.mxu3 %v1354_v31 }
  0x8c   :  { %545 = vmatmul.bf16.gmra.mxu0 %v1331_v32  ;;  %585 = vmatmul.bf16.gmra.mxu1 %v1339_v33 }
  0x8d   :  { %625 = vmatmul.bf16.gmra.mxu2 %v1347_v34  ;;  %665 = vmatmul.bf16.gmra.mxu3 %v1355_v35 }
  0x9c   :  { %550 = vmatmul.bf16.gmra.mxu0 %v1332_v36  ;;  %590 = vmatmul.bf16.gmra.mxu1 %v1340_v37 }
  0x9d   :  { %630 = vmatmul.bf16.gmra.mxu2 %v1348_v38  ;;  %670 = vmatmul.bf16.gmra.mxu3 %v1356_v39 }
  0xa9   :  { %v516_v41 = vpop.f32.mrf.mxu0  ;;  %v556_v42 = vpop.f32.mrf.mxu1 }
  0xaa   :  { %v875_v44 = vmul.f32 %v1510_v40, %v516_v41  ;;  %v891_v45 = vmul.f32 %v1510_v40, %v556_v42 }
  0xac   :  { %v943_v46 = vadd.f32 %v1515_v43, %v875_v44  ;;  %v959_v47 = vadd.f32 %v1515_v43, %v891_v45 }
  0xae   :  { %v1007_v48 = vmax.f32 %v943_v46, 0.0  ;;  %v1023_v49 = vmax.f32 %v959_v47, 0.0 }
  0xb0   :  { %v596_v50 = vpop.f32.mrf.mxu2  ;;  %v636_v51 = vpop.f32.mrf.mxu3  ;;  %1071 = vst [vmem:[#allocation7] sm:$0xff] %v1007_v48 }
  0xb1   :  { %v518_v52 = vpop.f32.mrf.mxu0  ;;  %v558_v53 = vpop.f32.mrf.mxu1  ;;  %1087 = vst [vmem:[#allocation7 + $0x80] sm:$0xff] %v1023_v49  ;;  %v907_v54 = vmul.f32 %v1510_v40, %v596_v50  ;;  %v923_v55 = vmul.f32 %v1510_v40, %v636_v51 }
  0xb2   :  { %v876_v56 = vmul.f32 %v1510_v40, %v518_v52  ;;  %v892_v57 = vmul.f32 %v1510_v40, %v558_v53 }
  0xb3   :  { %v975_v58 = vadd.f32 %v1515_v43, %v907_v54  ;;  %v991_v59 = vadd.f32 %v1515_v43, %v923_v55 }
  0xb4   :  { %v944_v60 = vadd.f32 %v1515_v43, %v876_v56  ;;  %v960_v61 = vadd.f32 %v1515_v43, %v892_v57 }
  0xb5   :  { %v1039_v62 = vmax.f32 %v975_v58, 0.0  ;;  %v1055_v63 = vmax.f32 %v991_v59, 0.0 }
  0xb6   :  { %v1008_v0 = vmax.f32 %v944_v60, 0.0  ;;  %v1024_v1 = vmax.f32 %v960_v61, 0.0 }
  0xb7   :  { %1103 = vst [vmem:[#allocation7 + $0x100] sm:$0xff] %v1039_v62 }
  0xb8   :  { %v598_v2 = vpop.f32.mrf.mxu2  ;;  %v638_v3 = vpop.f32.mrf.mxu3  ;;  %1119 = vst [vmem:[#allocation7 + $0x180] sm:$0xff] %v1055_v63 }
  0xb9   :  { %v521_v4 = vpop.f32.mrf.mxu0  ;;  %v561_v5 = vpop.f32.mrf.mxu1  ;;  %1072 = vst [vmem:[#allocation7 + $0x8] sm:$0xff] %v1008_v0  ;;  %v908_v6 = vmul.f32 %v1510_v40, %v598_v2  ;;  %v924_v7 = vmul.f32 %v1510_v40, %v638_v3 }
  0xba   :  { %1088 = vst [vmem:[#allocation7 + $0x88] sm:$0xff] %v1024_v1  ;;  %v877_v8 = vmul.f32 %v1510_v40, %v521_v4  ;;  %v893_v9 = vmul.f32 %v1510_v40, %v561_v5 }
  0xbb   :  { %v976_v10 = vadd.f32 %v1515_v43, %v908_v6  ;;  %v992_v11 = vadd.f32 %v1515_v43, %v924_v7 }
  0xbc   :  { %v945_v12 = vadd.f32 %v1515_v43, %v877_v8  ;;  %v961_v13 = vadd.f32 %v1515_v43, %v893_v9 }
  0xbd   :  { %v1040_v14 = vmax.f32 %v976_v10, 0.0  ;;  %v1056_v15 = vmax.f32 %v992_v11, 0.0 }
  0xbe   :  { %v1009_v16 = vmax.f32 %v945_v12, 0.0  ;;  %v1025_v17 = vmax.f32 %v961_v13, 0.0 }
  0xbf   :  { %1104 = vst [vmem:[#allocation7 + $0x108] sm:$0xff] %v1040_v14 }
  0xc0   :  { %v601_v18 = vpop.f32.mrf.mxu2  ;;  %v641_v19 = vpop.f32.mrf.mxu3  ;;  %1120 = vst [vmem:[#allocation7 + $0x188] sm:$0xff] %v1056_v15 }
  0xc1   :  { %v523_v20 = vpop.f32.mrf.mxu0  ;;  %v563_v21 = vpop.f32.mrf.mxu1  ;;  %1073 = vst [vmem:[#allocation7 + $0x10] sm:$0xff] %v1009_v16  ;;  %v909_v22 = vmul.f32 %v1510_v40, %v601_v18  ;;  %v925_v23 = vmul.f32 %v1510_v40, %v641_v19 }
  0xc2   :  { %1089 = vst [vmem:[#allocation7 + $0x90] sm:$0xff] %v1025_v17  ;;  %v878_v24 = vmul.f32 %v1510_v40, %v523_v20  ;;  %v894_v25 = vmul.f32 %v1510_v40, %v563_v21 }
  0xc3   :  { %v977_v26 = vadd.f32 %v1515_v43, %v909_v22  ;;  %v993_v27 = vadd.f32 %v1515_v43, %v925_v23 }
  0xc4   :  { %v946_v28 = vadd.f32 %v1515_v43, %v878_v24  ;;  %v962_v29 = vadd.f32 %v1515_v43, %v894_v25 }
  0xc5   :  { %v1041_v30 = vmax.f32 %v977_v26, 0.0  ;;  %v1057_v31 = vmax.f32 %v993_v27, 0.0 }
  0xc6   :  { %v1010_v32 = vmax.f32 %v946_v28, 0.0  ;;  %v1026_v33 = vmax.f32 %v962_v29, 0.0 }
  0xc7   :  { %1105 = vst [vmem:[#allocation7 + $0x110] sm:$0xff] %v1041_v30 }
  0xc8   :  { %v603_v34 = vpop.f32.mrf.mxu2  ;;  %v643_v35 = vpop.f32.mrf.mxu3  ;;  %1121 = vst [vmem:[#allocation7 + $0x190] sm:$0xff] %v1057_v31 }
  0xc9   :  { %v526_v36 = vpop.f32.mrf.mxu0  ;;  %v566_v37 = vpop.f32.mrf.mxu1  ;;  %1074 = vst [vmem:[#allocation7 + $0x18] sm:$0xff] %v1010_v32  ;;  %v910_v38 = vmul.f32 %v1510_v40, %v603_v34  ;;  %v926_v39 = vmul.f32 %v1510_v40, %v643_v35 }
  0xca   :  { %1090 = vst [vmem:[#allocation7 + $0x98] sm:$0xff] %v1026_v33  ;;  %v879_v41 = vmul.f32 %v1510_v40, %v526_v36  ;;  %v895_v42 = vmul.f32 %v1510_v40, %v566_v37 }
  0xcb   :  { %v978_v44 = vadd.f32 %v1515_v43, %v910_v38  ;;  %v994_v45 = vadd.f32 %v1515_v43, %v926_v39 }
  0xcc   :  { %v947_v46 = vadd.f32 %v1515_v43, %v879_v41  ;;  %v963_v47 = vadd.f32 %v1515_v43, %v895_v42 }
  0xcd   :  { %v1042_v48 = vmax.f32 %v978_v44, 0.0  ;;  %v1058_v49 = vmax.f32 %v994_v45, 0.0 }
  0xce   :  { %v1011_v50 = vmax.f32 %v947_v46, 0.0  ;;  %v1027_v51 = vmax.f32 %v963_v47, 0.0 }
  0xcf   :  { %1106 = vst [vmem:[#allocation7 + $0x118] sm:$0xff] %v1042_v48 }
  0xd0   :  { %v606_v52 = vpop.f32.mrf.mxu2  ;;  %v646_v53 = vpop.f32.mrf.mxu3  ;;  %1122 = vst [vmem:[#allocation7 + $0x198] sm:$0xff] %v1058_v49 }
  0xd1   :  { %v528_v54 = vpop.f32.mrf.mxu0  ;;  %v568_v55 = vpop.f32.mrf.mxu1  ;;  %1075 = vst [vmem:[#allocation7 + $0x20] sm:$0xff] %v1011_v50  ;;  %v911_v56 = vmul.f32 %v1510_v40, %v606_v52  ;;  %v927_v57 = vmul.f32 %v1510_v40, %v646_v53 }
  0xd2   :  { %1091 = vst [vmem:[#allocation7 + $0xa0] sm:$0xff] %v1027_v51  ;;  %v880_v58 = vmul.f32 %v1510_v40, %v528_v54  ;;  %v896_v59 = vmul.f32 %v1510_v40, %v568_v55 }
  0xd3   :  { %v979_v60 = vadd.f32 %v1515_v43, %v911_v56  ;;  %v995_v61 = vadd.f32 %v1515_v43, %v927_v57 }
  0xd4   :  { %v948_v62 = vadd.f32 %v1515_v43, %v880_v58  ;;  %v964_v63 = vadd.f32 %v1515_v43, %v896_v59 }
  0xd5   :  { %v1043_v0 = vmax.f32 %v979_v60, 0.0  ;;  %v1059_v1 = vmax.f32 %v995_v61, 0.0 }
  0xd6   :  { %v1012_v2 = vmax.f32 %v948_v62, 0.0  ;;  %v1028_v3 = vmax.f32 %v964_v63, 0.0 }
  0xd7   :  { %1107 = vst [vmem:[#allocation7 + $0x120] sm:$0xff] %v1043_v0 }
  0xd8   :  { %v608_v4 = vpop.f32.mrf.mxu2  ;;  %v648_v5 = vpop.f32.mrf.mxu3  ;;  %1123 = vst [vmem:[#allocation7 + $0x1a0] sm:$0xff] %v1059_v1 }
  0xd9   :  { %v531_v6 = vpop.f32.mrf.mxu0  ;;  %v571_v7 = vpop.f32.mrf.mxu1  ;;  %1076 = vst [vmem:[#allocation7 + $0x28] sm:$0xff] %v1012_v2  ;;  %v912_v8 = vmul.f32 %v1510_v40, %v608_v4  ;;  %v928_v9 = vmul.f32 %v1510_v40, %v648_v5 }
  0xda   :  { %1092 = vst [vmem:[#allocation7 + $0xa8] sm:$0xff] %v1028_v3  ;;  %v881_v10 = vmul.f32 %v1510_v40, %v531_v6  ;;  %v897_v11 = vmul.f32 %v1510_v40, %v571_v7 }
  0xdb   :  { %v980_v12 = vadd.f32 %v1515_v43, %v912_v8  ;;  %v996_v13 = vadd.f32 %v1515_v43, %v928_v9 }
  0xdc   :  { %v949_v14 = vadd.f32 %v1515_v43, %v881_v10  ;;  %v965_v15 = vadd.f32 %v1515_v43, %v897_v11 }
  0xdd   :  { %v1044_v16 = vmax.f32 %v980_v12, 0.0  ;;  %v1060_v17 = vmax.f32 %v996_v13, 0.0 }
  0xde   :  { %v1013_v18 = vmax.f32 %v949_v14, 0.0  ;;  %v1029_v19 = vmax.f32 %v965_v15, 0.0 }
  0xdf   :  { %1108 = vst [vmem:[#allocation7 + $0x128] sm:$0xff] %v1044_v16 }
  0xe0   :  { %v611_v20 = vpop.f32.mrf.mxu2  ;;  %v651_v21 = vpop.f32.mrf.mxu3  ;;  %1124 = vst [vmem:[#allocation7 + $0x1a8] sm:$0xff] %v1060_v17 }
  0xe1   :  { %v533_v22 = vpop.f32.mrf.mxu0  ;;  %v573_v23 = vpop.f32.mrf.mxu1  ;;  %1077 = vst [vmem:[#allocation7 + $0x30] sm:$0xff] %v1013_v18  ;;  %v913_v24 = vmul.f32 %v1510_v40, %v611_v20  ;;  %v929_v25 = vmul.f32 %v1510_v40, %v651_v21 }
  0xe2   :  { %1093 = vst [vmem:[#allocation7 + $0xb0] sm:$0xff] %v1029_v19  ;;  %v882_v26 = vmul.f32 %v1510_v40, %v533_v22  ;;  %v898_v27 = vmul.f32 %v1510_v40, %v573_v23 }
  0xe3   :  { %v981_v28 = vadd.f32 %v1515_v43, %v913_v24  ;;  %v997_v29 = vadd.f32 %v1515_v43, %v929_v25 }
  0xe4   :  { %v950_v30 = vadd.f32 %v1515_v43, %v882_v26  ;;  %v966_v31 = vadd.f32 %v1515_v43, %v898_v27 }
  0xe5   :  { %v1045_v32 = vmax.f32 %v981_v28, 0.0  ;;  %v1061_v33 = vmax.f32 %v997_v29, 0.0 }
  0xe6   :  { %v1014_v34 = vmax.f32 %v950_v30, 0.0  ;;  %v1030_v35 = vmax.f32 %v966_v31, 0.0 }
  0xe7   :  { %1109 = vst [vmem:[#allocation7 + $0x130] sm:$0xff] %v1045_v32 }
  0xe8   :  { %v613_v36 = vpop.f32.mrf.mxu2  ;;  %v653_v37 = vpop.f32.mrf.mxu3  ;;  %1125 = vst [vmem:[#allocation7 + $0x1b0] sm:$0xff] %v1061_v33 }
  0xe9   :  { %v536_v38 = vpop.f32.mrf.mxu0  ;;  %v576_v39 = vpop.f32.mrf.mxu1  ;;  %1078 = vst [vmem:[#allocation7 + $0x38] sm:$0xff] %v1014_v34  ;;  %v914_v41 = vmul.f32 %v1510_v40, %v613_v36  ;;  %v930_v42 = vmul.f32 %v1510_v40, %v653_v37 }
  0xea   :  { %1094 = vst [vmem:[#allocation7 + $0xb8] sm:$0xff] %v1030_v35  ;;  %v883_v44 = vmul.f32 %v1510_v40, %v536_v38  ;;  %v899_v45 = vmul.f32 %v1510_v40, %v576_v39 }
  0xeb   :  { %v982_v46 = vadd.f32 %v1515_v43, %v914_v41  ;;  %v998_v47 = vadd.f32 %v1515_v43, %v930_v42 }
  0xec   :  { %v951_v48 = vadd.f32 %v1515_v43, %v883_v44  ;;  %v967_v49 = vadd.f32 %v1515_v43, %v899_v45 }
  0xed   :  { %v1046_v50 = vmax.f32 %v982_v46, 0.0  ;;  %v1062_v51 = vmax.f32 %v998_v47, 0.0 }
  0xee   :  { %v1015_v52 = vmax.f32 %v951_v48, 0.0  ;;  %v1031_v53 = vmax.f32 %v967_v49, 0.0 }
  0xef   :  { %1110 = vst [vmem:[#allocation7 + $0x138] sm:$0xff] %v1046_v50 }
  0xf0   :  { %v616_v54 = vpop.f32.mrf.mxu2  ;;  %v656_v55 = vpop.f32.mrf.mxu3  ;;  %1126 = vst [vmem:[#allocation7 + $0x1b8] sm:$0xff] %v1062_v51 }
  0xf1   :  { %v538_v56 = vpop.f32.mrf.mxu0  ;;  %v578_v57 = vpop.f32.mrf.mxu1  ;;  %1079 = vst [vmem:[#allocation7 + $0x40] sm:$0xff] %v1015_v52  ;;  %v915_v58 = vmul.f32 %v1510_v40, %v616_v54  ;;  %v931_v59 = vmul.f32 %v1510_v40, %v656_v55 }
  0xf2   :  { %1095 = vst [vmem:[#allocation7 + $0xc0] sm:$0xff] %v1031_v53  ;;  %v884_v60 = vmul.f32 %v1510_v40, %v538_v56  ;;  %v900_v61 = vmul.f32 %v1510_v40, %v578_v57 }
  0xf3   :  { %v983_v62 = vadd.f32 %v1515_v43, %v915_v58  ;;  %v999_v63 = vadd.f32 %v1515_v43, %v931_v59 }
  0xf4   :  { %v952_v0 = vadd.f32 %v1515_v43, %v884_v60  ;;  %v968_v1 = vadd.f32 %v1515_v43, %v900_v61 }
  0xf5   :  { %v1047_v2 = vmax.f32 %v983_v62, 0.0  ;;  %v1063_v3 = vmax.f32 %v999_v63, 0.0 }
  0xf6   :  { %v1016_v4 = vmax.f32 %v952_v0, 0.0  ;;  %v1032_v5 = vmax.f32 %v968_v1, 0.0 }
  0xf7   :  { %1111 = vst [vmem:[#allocation7 + $0x140] sm:$0xff] %v1047_v2 }
  0xf8   :  { %v618_v6 = vpop.f32.mrf.mxu2  ;;  %v658_v7 = vpop.f32.mrf.mxu3  ;;  %1127 = vst [vmem:[#allocation7 + $0x1c0] sm:$0xff] %v1063_v3 }
  0xf9   :  { %v541_v8 = vpop.f32.mrf.mxu0  ;;  %v581_v9 = vpop.f32.mrf.mxu1  ;;  %1080 = vst [vmem:[#allocation7 + $0x48] sm:$0xff] %v1016_v4  ;;  %v916_v10 = vmul.f32 %v1510_v40, %v618_v6  ;;  %v932_v11 = vmul.f32 %v1510_v40, %v658_v7 }
  0xfa   :  { %1096 = vst [vmem:[#allocation7 + $0xc8] sm:$0xff] %v1032_v5  ;;  %v885_v12 = vmul.f32 %v1510_v40, %v541_v8  ;;  %v901_v13 = vmul.f32 %v1510_v40, %v581_v9 }
  0xfb   :  { %v984_v14 = vadd.f32 %v1515_v43, %v916_v10  ;;  %v1000_v15 = vadd.f32 %v1515_v43, %v932_v11 }
  0xfc   :  { %v953_v16 = vadd.f32 %v1515_v43, %v885_v12  ;;  %v969_v17 = vadd.f32 %v1515_v43, %v901_v13 }
  0xfd   :  { %v1048_v18 = vmax.f32 %v984_v14, 0.0  ;;  %v1064_v19 = vmax.f32 %v1000_v15, 0.0 }
  0xfe   :  { %v1017_v20 = vmax.f32 %v953_v16, 0.0  ;;  %v1033_v21 = vmax.f32 %v969_v17, 0.0 }
  0xff   :  { %1112 = vst [vmem:[#allocation7 + $0x148] sm:$0xff] %v1048_v18 }
 0x100   :  { %v621_v22 = vpop.f32.mrf.mxu2  ;;  %v661_v23 = vpop.f32.mrf.mxu3  ;;  %1128 = vst [vmem:[#allocation7 + $0x1c8] sm:$0xff] %v1064_v19 }
 0x101   :  { %v543_v24 = vpop.f32.mrf.mxu0  ;;  %v583_v25 = vpop.f32.mrf.mxu1  ;;  %1081 = vst [vmem:[#allocation7 + $0x50] sm:$0xff] %v1017_v20  ;;  %v917_v26 = vmul.f32 %v1510_v40, %v621_v22  ;;  %v933_v27 = vmul.f32 %v1510_v40, %v661_v23 }
 0x102   :  { %1097 = vst [vmem:[#allocation7 + $0xd0] sm:$0xff] %v1033_v21  ;;  %v886_v28 = vmul.f32 %v1510_v40, %v543_v24  ;;  %v902_v29 = vmul.f32 %v1510_v40, %v583_v25 }
 0x103   :  { %v985_v30 = vadd.f32 %v1515_v43, %v917_v26  ;;  %v1001_v31 = vadd.f32 %v1515_v43, %v933_v27 }
 0x104   :  { %v954_v32 = vadd.f32 %v1515_v43, %v886_v28  ;;  %v970_v33 = vadd.f32 %v1515_v43, %v902_v29 }
 0x105   :  { %v1049_v34 = vmax.f32 %v985_v30, 0.0  ;;  %v1065_v35 = vmax.f32 %v1001_v31, 0.0 }
 0x106   :  { %v1018_v36 = vmax.f32 %v954_v32, 0.0  ;;  %v1034_v37 = vmax.f32 %v970_v33, 0.0 }
 0x107   :  { %1113 = vst [vmem:[#allocation7 + $0x150] sm:$0xff] %v1049_v34 }
 0x108   :  { %v623_v38 = vpop.f32.mrf.mxu2  ;;  %v663_v39 = vpop.f32.mrf.mxu3  ;;  %1129 = vst [vmem:[#allocation7 + $0x1d0] sm:$0xff] %v1065_v35 }
 0x109   :  { %v546_v41 = vpop.f32.mrf.mxu0  ;;  %v586_v42 = vpop.f32.mrf.mxu1  ;;  %1082 = vst [vmem:[#allocation7 + $0x58] sm:$0xff] %v1018_v36  ;;  %v918_v44 = vmul.f32 %v1510_v40, %v623_v38  ;;  %v934_v45 = vmul.f32 %v1510_v40, %v663_v39 }
 0x10a   :  { %1098 = vst [vmem:[#allocation7 + $0xd8] sm:$0xff] %v1034_v37  ;;  %v887_v46 = vmul.f32 %v1510_v40, %v546_v41  ;;  %v903_v47 = vmul.f32 %v1510_v40, %v586_v42 }
 0x10b   :  { %v986_v48 = vadd.f32 %v1515_v43, %v918_v44  ;;  %v1002_v49 = vadd.f32 %v1515_v43, %v934_v45 }
 0x10c   :  { %v955_v50 = vadd.f32 %v1515_v43, %v887_v46  ;;  %v971_v51 = vadd.f32 %v1515_v43, %v903_v47 }
 0x10d   :  { %v1050_v52 = vmax.f32 %v986_v48, 0.0  ;;  %v1066_v53 = vmax.f32 %v1002_v49, 0.0 }
 0x10e   :  { %v1019_v54 = vmax.f32 %v955_v50, 0.0  ;;  %v1035_v55 = vmax.f32 %v971_v51, 0.0 }
 0x10f   :  { %1114 = vst [vmem:[#allocation7 + $0x158] sm:$0xff] %v1050_v52 }
 0x110   :  { %v626_v56 = vpop.f32.mrf.mxu2  ;;  %v666_v57 = vpop.f32.mrf.mxu3  ;;  %1130 = vst [vmem:[#allocation7 + $0x1d8] sm:$0xff] %v1066_v53 }
 0x111   :  { %v548_v58 = vpop.f32.mrf.mxu0  ;;  %v588_v59 = vpop.f32.mrf.mxu1  ;;  %1083 = vst [vmem:[#allocation7 + $0x60] sm:$0xff] %v1019_v54  ;;  %v919_v60 = vmul.f32 %v1510_v40, %v626_v56  ;;  %v935_v61 = vmul.f32 %v1510_v40, %v666_v57 }
 0x112   :  { %1099 = vst [vmem:[#allocation7 + $0xe0] sm:$0xff] %v1035_v55  ;;  %v888_v62 = vmul.f32 %v1510_v40, %v548_v58  ;;  %v904_v63 = vmul.f32 %v1510_v40, %v588_v59 }
 0x113   :  { %v987_v0 = vadd.f32 %v1515_v43, %v919_v60  ;;  %v1003_v1 = vadd.f32 %v1515_v43, %v935_v61 }
 0x114   :  { %v956_v2 = vadd.f32 %v1515_v43, %v888_v62  ;;  %v972_v3 = vadd.f32 %v1515_v43, %v904_v63 }
 0x115   :  { %v1051_v4 = vmax.f32 %v987_v0, 0.0  ;;  %v1067_v5 = vmax.f32 %v1003_v1, 0.0 }
 0x116   :  { %v1020_v6 = vmax.f32 %v956_v2, 0.0  ;;  %v1036_v7 = vmax.f32 %v972_v3, 0.0 }
 0x117   :  { %1115 = vst [vmem:[#allocation7 + $0x160] sm:$0xff] %v1051_v4 }
 0x118   :  { %v628_v8 = vpop.f32.mrf.mxu2  ;;  %v668_v9 = vpop.f32.mrf.mxu3  ;;  %1131 = vst [vmem:[#allocation7 + $0x1e0] sm:$0xff] %v1067_v5 }
 0x119   :  { %v551_v10 = vpop.f32.mrf.mxu0  ;;  %v591_v11 = vpop.f32.mrf.mxu1  ;;  %1084 = vst [vmem:[#allocation7 + $0x68] sm:$0xff] %v1020_v6  ;;  %v920_v12 = vmul.f32 %v1510_v40, %v628_v8  ;;  %v936_v13 = vmul.f32 %v1510_v40, %v668_v9 }
 0x11a   :  { %1100 = vst [vmem:[#allocation7 + $0xe8] sm:$0xff] %v1036_v7  ;;  %v889_v14 = vmul.f32 %v1510_v40, %v551_v10  ;;  %v905_v15 = vmul.f32 %v1510_v40, %v591_v11 }
 0x11b   :  { %v988_v16 = vadd.f32 %v1515_v43, %v920_v12  ;;  %v1004_v17 = vadd.f32 %v1515_v43, %v936_v13 }
 0x11c   :  { %v957_v18 = vadd.f32 %v1515_v43, %v889_v14  ;;  %v973_v19 = vadd.f32 %v1515_v43, %v905_v15 }
 0x11d   :  { %v1052_v20 = vmax.f32 %v988_v16, 0.0  ;;  %v1068_v21 = vmax.f32 %v1004_v17, 0.0 }
 0x11e   :  { %v1021_v22 = vmax.f32 %v957_v18, 0.0  ;;  %v1037_v23 = vmax.f32 %v973_v19, 0.0 }
 0x11f   :  { %1116 = vst [vmem:[#allocation7 + $0x168] sm:$0xff] %v1052_v20 }
 0x120   :  { %v631_v24 = vpop.f32.mrf.mxu2  ;;  %v671_v25 = vpop.f32.mrf.mxu3  ;;  %1132 = vst [vmem:[#allocation7 + $0x1e8] sm:$0xff] %v1068_v21 }
 0x121   :  { %v553_v26 = vpop.f32.mrf.mxu0  ;;  %v593_v27 = vpop.f32.mrf.mxu1  ;;  %1085 = vst [vmem:[#allocation7 + $0x70] sm:$0xff] %v1021_v22  ;;  %v921_v28 = vmul.f32 %v1510_v40, %v631_v24  ;;  %v937_v29 = vmul.f32 %v1510_v40, %v671_v25 }
 0x122   :  { %1101 = vst [vmem:[#allocation7 + $0xf0] sm:$0xff] %v1037_v23  ;;  %v890_v30 = vmul.f32 %v1510_v40, %v553_v26  ;;  %v906_v31 = vmul.f32 %v1510_v40, %v593_v27 }
 0x123   :  { %v989_v32 = vadd.f32 %v1515_v43, %v921_v28  ;;  %v1005_v33 = vadd.f32 %v1515_v43, %v937_v29 }
 0x124   :  { %v958_v34 = vadd.f32 %v1515_v43, %v890_v30  ;;  %v974_v35 = vadd.f32 %v1515_v43, %v906_v31 }
 0x125   :  { %v1053_v36 = vmax.f32 %v989_v32, 0.0  ;;  %v1069_v37 = vmax.f32 %v1005_v33, 0.0 }
 0x126   :  { %v1022_v38 = vmax.f32 %v958_v34, 0.0  ;;  %v1038_v39 = vmax.f32 %v974_v35, 0.0 }
 0x127   :  { %1117 = vst [vmem:[#allocation7 + $0x170] sm:$0xff] %v1053_v36 }
 0x128   :  { %v633_v41 = vpop.f32.mrf.mxu2  ;;  %v673_v42 = vpop.f32.mrf.mxu3  ;;  %1133 = vst [vmem:[#allocation7 + $0x1f0] sm:$0xff] %v1069_v37 }
 0x129   :  { %1086 = vst [vmem:[#allocation7 + $0x78] sm:$0xff] %v1022_v38  ;;  %v922_v44 = vmul.f32 %v1510_v40, %v633_v41  ;;  %v938_v45 = vmul.f32 %v1510_v40, %v673_v42 }
 0x12a   :  { %1102 = vst [vmem:[#allocation7 + $0xf8] sm:$0xff] %v1038_v39 }
 0x12b   :  { %v990_v46 = vadd.f32 %v1515_v43, %v922_v44  ;;  %v1006_v47 = vadd.f32 %v1515_v43, %v938_v45 }
 0x12d   :  { %v1054_v48 = vmax.f32 %v990_v46, 0.0  ;;  %v1070_v49 = vmax.f32 %v1006_v47, 0.0 }
 0x12f   :  { %1118 = vst [vmem:[#allocation7 + $0x178] sm:$0xff] %v1054_v48 }
 0x130   :  { %1134 = vst [vmem:[#allocation7 + $0x1f8] sm:$0xff] %v1070_v49 }
 0x131   :  { %1147 = dma.vmem_to_hbm [thread:$0]  %s1140_s3, 8192, %s1142_s5, [#allocation4], %s1474_s6, %s1474_s6, %s1475_s7  }
 0x132   :  { %1467 = dma.done.wait [#allocation4], 8192  }
 0x133   :  { %1468 = vsyncadd [#allocation4], 4294959104 }
 0x134   :  { %1152 = vsyncpa [#allocation3], 1 }
 0x135   :  { %1153 = vsyncpa [#allocation6], 1 }
 0x136   :  { %1154 = vsyncpa [#allocation4], 1 }

</bundles_post_ra>
